<compile_context>
chip_gen: v7x
topology: tpu7x:2x2x1
jax: 0.10.0
libtpu: 0.0.40
codegen_flags: <defaults>
</compile_context>

<pallas_src>
import functools

import jax
import jax.numpy as jnp
from jax.experimental import pallas as pl
from jax.experimental.pallas import tpu as pltpu


def _round_up(n, m):
    return ((n + m - 1) // m) * m


def mlp_kernel(x_ref, w1_ref, b1_ref, w2_ref, b2_ref, w3_ref, b3_ref, o_ref):
    # Fused 3-layer MLP: matmuls on the MXU (f32 accumulation), ReLU on the VPU,
    # one pass through VMEM per batch tile.
    x = x_ref[...]
    h1 = jnp.dot(x, w1_ref[...], preferred_element_type=jnp.float32) + b1_ref[...]
    h1 = jnp.maximum(h1, 0.0)
    h2 = jnp.dot(h1.astype(w2_ref.dtype), w2_ref[...],
                 preferred_element_type=jnp.float32) + b2_ref[...]
    h2 = jnp.maximum(h2, 0.0)
    out = jnp.dot(h2.astype(w3_ref.dtype), w3_ref[...],
                  preferred_element_type=jnp.float32) + b3_ref[...]
    o_ref[...] = out.astype(o_ref.dtype)


@functools.partial(jax.jit, static_argnames=("tm", "mxu_dtype"))
def mlp_baseline(x, w1, b1, w2, b2, w3, b3, *, tm=512, mxu_dtype=None):
    """Fused MLP forward. x: [B, D_in] -> [B, D_out].

    Weights are stored transposed vs. PyTorch, i.e. W_i is [in, out] so the
    kernel computes x @ W + b (PyTorch Linear does x @ W.T + b).
    """
    out_dtype = x.dtype
    B, d_in = x.shape
    h1 = w1.shape[1]          # 128
    h2 = w2.shape[1]          # 64
    d_out = w3.shape[1]

    # ---- lane-dense padding of feature dims (exact: zero cols/rows/biases) ----
    h1p = _round_up(h1, 128)
    h2p = _round_up(h2, 128)
    d_out_p = _round_up(d_out, 128)

    b1 = b1.reshape(1, -1).astype(jnp.float32)
    b2 = b2.reshape(1, -1).astype(jnp.float32)
    b3 = b3.reshape(1, -1).astype(jnp.float32)

    w1p = jnp.pad(w1, ((0, 0), (0, h1p - h1)))
    b1p = jnp.pad(b1, ((0, 0), (0, h1p - h1)))
    w2p = jnp.pad(w2, ((0, h1p - h1), (0, h2p - h2)))
    b2p = jnp.pad(b2, ((0, 0), (0, h2p - h2)))
    w3p = jnp.pad(w3, ((0, h2p - h2), (0, d_out_p - d_out)))
    b3p = jnp.pad(b3, ((0, 0), (0, d_out_p - d_out)))

    # Optional bf16 MXU inputs (f32 accumulation via preferred_element_type).
    if mxu_dtype is not None:
        x = x.astype(mxu_dtype)
        w1p = w1p.astype(mxu_dtype)
        w2p = w2p.astype(mxu_dtype)
        w3p = w3p.astype(mxu_dtype)

    # ---- batch tiling: big tiles, but keep >= 2 grid steps for megacore. ----
    tm_eff = max(8, min(tm, _round_up(pl.cdiv(B, 2), 8)))
    B_pad = _round_up(B, tm_eff)
    if B_pad != B:
        x = jnp.pad(x, ((0, B_pad - B), (0, 0)))
    grid = (B_pad // tm_eff,)

    # Batch is tiled; parameters are small and stay resident across grid steps.
    in_specs = [
        pl.BlockSpec((tm_eff, d_in), lambda i: (i, 0)),    # x tile
        pl.BlockSpec((d_in, h1p), lambda i: (0, 0)),       # W1
        pl.BlockSpec((1, h1p), lambda i: (0, 0)),          # b1
        pl.BlockSpec((h1p, h2p), lambda i: (0, 0)),        # W2
        pl.BlockSpec((1, h2p), lambda i: (0, 0)),          # b2
        pl.BlockSpec((h2p, d_out_p), lambda i: (0, 0)),    # W3
        pl.BlockSpec((1, d_out_p), lambda i: (0, 0)),      # b3
    ]
    out_specs = pl.BlockSpec((tm_eff, d_out_p), lambda i: (i, 0))

    flops = 2 * B_pad * (d_in * h1p + h1p * h2p + h2p * d_out_p)
    bytes_accessed = (
        x.size * x.dtype.itemsize
        + sum(a.size * a.dtype.itemsize for a in (w1p, b1p, w2p, b2p, w3p, b3p))
        + B_pad * d_out_p * jnp.dtype(out_dtype).itemsize
    )

    out_padded = pl.pallas_call(
        mlp_kernel,
        out_shape=jax.ShapeDtypeStruct((B_pad, d_out_p), out_dtype),
        grid=grid,
        in_specs=in_specs,
        out_specs=out_specs,
        compiler_params=pltpu.CompilerParams(
            dimension_semantics=("parallel",),
        ),
        cost_estimate=pl.CostEstimate(
            flops=flops, transcendentals=0, bytes_accessed=bytes_accessed),
    )(x, w1p, b1p, w2p, b2p, w3p, b3p)

    return out_padded[:B, :d_out]


def init_params(key, input_dim, output_dim, dtype=jnp.float32):
    """Deterministic init matching PyTorch Linear defaults (stored as [in, out])."""
    k1, k2, k3, k4, k5, k6 = jax.random.split(key, 6)

    def uniform_linear(kw, kb, fan_in, fan_out):
        # PyTorch default: U(-1/sqrt(fan_in), 1/sqrt(fan_in)) for both W and b.
        bound = 1.0 / jnp.sqrt(jnp.asarray(fan_in, dtype))
        w = jax.random.uniform(kw, (fan_in, fan_out), dtype, -bound, bound)
        b = jax.random.uniform(kb, (1, fan_out), dtype, -bound, bound)
        return w, b

    w1, b1 = uniform_linear(k1, k2, input_dim, 128)
    w2, b2 = uniform_linear(k3, k4, 128, 64)
    w3, b3 = uniform_linear(k5, k6, 64, output_dim)
    return w1, b1, w2, b2, w3, b3


if __name__ == "__main__":
    key = jax.random.PRNGKey(0)
    kx, kp = jax.random.split(key)

    B, input_dim, output_dim = 16, 32, 8
    x = jax.random.normal(kx, (B, input_dim), jnp.float32)
    w1, b1, w2, b2, w3, b3 = init_params(kp, input_dim, output_dim)

    # Pure-JAX reference.
    h = jnp.maximum(x @ w1 + b1, 0.0)
    h = jnp.maximum(h @ w2 + b2, 0.0)
    ref = h @ w3 + b3

    # f32 path (default): exact up to f32 rounding.
    out = jax.block_until_ready(mlp_baseline(x, w1, b1, w2, b2, w3, b3))
    assert out.shape == (B, output_dim)
    assert jnp.allclose(out, ref, atol=1e-5, rtol=1e-5)

    # bf16 MXU path (v5e-oriented); f32 accumulation, looser tolerance.
    out_bf16 = jax.block_until_ready(
        mlp_baseline(x, w1, b1, w2, b2, w3, b3, mxu_dtype=jnp.bfloat16))
    assert out_bf16.shape == (B, output_dim)
    assert jnp.allclose(out_bf16, ref, atol=1e-1, rtol=1e-1)

    print("KERNEL_OK")
</pallas_src>

<mosaic_0001>
module attributes {stable_mosaic.version = 11 : i64} {
  func.func @mlp_kernel(%arg0: i32, %arg1: memref<8x32xf32, #tpu.memory_space<vmem>>, %arg2: memref<32x128xf32, #tpu.memory_space<vmem>>, %arg3: memref<1x128xf32, #tpu.memory_space<vmem>>, %arg4: memref<128x128xf32, #tpu.memory_space<vmem>>, %arg5: memref<1x128xf32, #tpu.memory_space<vmem>>, %arg6: memref<128x128xf32, #tpu.memory_space<vmem>>, %arg7: memref<1x128xf32, #tpu.memory_space<vmem>>, %arg8: memref<8x128xf32, #tpu.memory_space<vmem>>) attributes {dimension_semantics = [#tpu.dimension_semantics<parallel>], iteration_bounds = array<i64: 2>, scalar_prefetch = 0 : i64, scratch_operands = 0 : i64, tpu.core_type = #tpu.core_type<tc>, window_params = [{transform_indices = @transform_0, window_bounds = array<i64: 8, 32>}, {pipeline_mode = #tpu.pipeline_mode<synchronous>, transform_indices = @transform_1, window_bounds = array<i64: 32, 128>}, {pipeline_mode = #tpu.pipeline_mode<synchronous>, transform_indices = @transform_2, window_bounds = array<i64: 1, 128>}, {pipeline_mode = #tpu.pipeline_mode<synchronous>, transform_indices = @transform_3, window_bounds = array<i64: 128, 128>}, {pipeline_mode = #tpu.pipeline_mode<synchronous>, transform_indices = @transform_4, window_bounds = array<i64: 1, 128>}, {pipeline_mode = #tpu.pipeline_mode<synchronous>, transform_indices = @transform_5, window_bounds = array<i64: 128, 128>}, {pipeline_mode = #tpu.pipeline_mode<synchronous>, transform_indices = @transform_6, window_bounds = array<i64: 1, 128>}, {transform_indices = @transform_7, window_bounds = array<i64: 8, 128>}]} {
    %c0 = arith.constant 0 : index
    %c0_0 = arith.constant 0 : index
    %0 = vector.load %arg1[%c0, %c0_0] : memref<8x32xf32, #tpu.memory_space<vmem>>, vector<8x32xf32>
    %c0_1 = arith.constant 0 : index
    %c0_2 = arith.constant 0 : index
    %1 = vector.load %arg2[%c0_1, %c0_2] : memref<32x128xf32, #tpu.memory_space<vmem>>, vector<32x128xf32>
    %cst = arith.constant dense<0.000000e+00> : vector<8x128xf32>
    %2 = tpu.matmul %0, %1, %cst {dimension_numbers = #tpu.dot_dimension_numbers<[1], [0], [0], [1], [0, 0, 1, 1], [], []>} : vector<8x32xf32>, vector<32x128xf32>, vector<8x128xf32> -> vector<8x128xf32>
    %c0_3 = arith.constant 0 : index
    %c0_4 = arith.constant 0 : index
    %3 = vector.load %arg3[%c0_3, %c0_4] : memref<1x128xf32, #tpu.memory_space<vmem>>, vector<1x128xf32>
    %4 = vector.broadcast %3 : vector<1x128xf32> to vector<8x128xf32>
    %5 = arith.addf %2, %4 : vector<8x128xf32>
    %cst_5 = arith.constant 0.000000e+00 : f32
    %6 = vector.broadcast %cst_5 : f32 to vector<8x128xf32>
    %7 = arith.maximumf %5, %6 : vector<8x128xf32>
    %c0_6 = arith.constant 0 : index
    %c0_7 = arith.constant 0 : index
    %8 = vector.load %arg4[%c0_6, %c0_7] : memref<128x128xf32, #tpu.memory_space<vmem>>, vector<128x128xf32>
    %cst_8 = arith.constant dense<0.000000e+00> : vector<8x128xf32>
    %9 = tpu.matmul %7, %8, %cst_8 {dimension_numbers = #tpu.dot_dimension_numbers<[1], [0], [0], [1], [0, 0, 1, 1], [], []>} : vector<8x128xf32>, vector<128x128xf32>, vector<8x128xf32> -> vector<8x128xf32>
    %c0_9 = arith.constant 0 : index
    %c0_10 = arith.constant 0 : index
    %10 = vector.load %arg5[%c0_9, %c0_10] : memref<1x128xf32, #tpu.memory_space<vmem>>, vector<1x128xf32>
    %11 = vector.broadcast %10 : vector<1x128xf32> to vector<8x128xf32>
    %12 = arith.addf %9, %11 : vector<8x128xf32>
    %cst_11 = arith.constant 0.000000e+00 : f32
    %13 = vector.broadcast %cst_11 : f32 to vector<8x128xf32>
    %14 = arith.maximumf %12, %13 : vector<8x128xf32>
    %c0_12 = arith.constant 0 : index
    %c0_13 = arith.constant 0 : index
    %15 = vector.load %arg6[%c0_12, %c0_13] : memref<128x128xf32, #tpu.memory_space<vmem>>, vector<128x128xf32>
    %cst_14 = arith.constant dense<0.000000e+00> : vector<8x128xf32>
    %16 = tpu.matmul %14, %15, %cst_14 {dimension_numbers = #tpu.dot_dimension_numbers<[1], [0], [0], [1], [0, 0, 1, 1], [], []>} : vector<8x128xf32>, vector<128x128xf32>, vector<8x128xf32> -> vector<8x128xf32>
    %c0_15 = arith.constant 0 : index
    %c0_16 = arith.constant 0 : index
    %17 = vector.load %arg7[%c0_15, %c0_16] : memref<1x128xf32, #tpu.memory_space<vmem>>, vector<1x128xf32>
    %18 = vector.broadcast %17 : vector<1x128xf32> to vector<8x128xf32>
    %19 = arith.addf %16, %18 : vector<8x128xf32>
    %c0_17 = arith.constant 0 : index
    %c0_18 = arith.constant 0 : index
    %20 = vector.load %arg8[%c0_17, %c0_18] : memref<8x128xf32, #tpu.memory_space<vmem>>, vector<8x128xf32>
    tpu.vector_store %arg8[%c0_17, %c0_18], %19 {strides = array<i32>} : memref<8x128xf32, #tpu.memory_space<vmem>>, vector<8x128xf32>,
    return
  }
  func.func @transform_0(%arg0: i32) -> (i32, i32) {
    %c0_i32 = arith.constant 0 : i32
    %c0_i32_0 = arith.constant 0 : i32
    return %arg0, %c0_i32 : i32, i32
  }
  func.func @transform_1(%arg0: i32) -> (i32, i32) {
    %c0_i32 = arith.constant 0 : i32
    %c0_i32_0 = arith.constant 0 : i32
    %c0_i32_1 = arith.constant 0 : i32
    return %c0_i32, %c0_i32_0 : i32, i32
  }
  func.func @transform_2(%arg0: i32) -> (i32, i32) {
    %c0_i32 = arith.constant 0 : i32
    %c0_i32_0 = arith.constant 0 : i32
    %c0_i32_1 = arith.constant 0 : i32
    return %c0_i32, %c0_i32_0 : i32, i32
  }
  func.func @transform_3(%arg0: i32) -> (i32, i32) {
    %c0_i32 = arith.constant 0 : i32
    %c0_i32_0 = arith.constant 0 : i32
    %c0_i32_1 = arith.constant 0 : i32
    return %c0_i32, %c0_i32_0 : i32, i32
  }
  func.func @transform_4(%arg0: i32) -> (i32, i32) {
    %c0_i32 = arith.constant 0 : i32
    %c0_i32_0 = arith.constant 0 : i32
    %c0_i32_1 = arith.constant 0 : i32
    return %c0_i32, %c0_i32_0 : i32, i32
  }
  func.func @transform_5(%arg0: i32) -> (i32, i32) {
    %c0_i32 = arith.constant 0 : i32
    %c0_i32_0 = arith.constant 0 : i32
    %c0_i32_1 = arith.constant 0 : i32
    return %c0_i32, %c0_i32_0 : i32, i32
  }
  func.func @transform_6(%arg0: i32) -> (i32, i32) {
    %c0_i32 = arith.constant 0 : i32
    %c0_i32_0 = arith.constant 0 : i32
    %c0_i32_1 = arith.constant 0 : i32
    return %c0_i32, %c0_i32_0 : i32, i32
  }
  func.func @transform_7(%arg0: i32) -> (i32, i32) {
    %c0_i32 = arith.constant 0 : i32
    %c0_i32_0 = arith.constant 0 : i32
    return %arg0, %c0_i32 : i32, i32
  }
}

</mosaic_0001>

<bundles_post_ra>
// kernel: mlp_baseline.1
= control target key start
LH: loop header
LB: loop body
LE: loop exit
PB: predicated region body
PF: predicated region fallthrough
CT: control target
= control target key end

     0   :  { %s851_s24 = smov 0   ;;  %s1013_s0 = inlined_call_operand.vmem [shape: f32[16,32], index: 0, kind: input, shape index: {}]   ;;  %s1014_s1 = inlined_call_operand.vmem [shape: f32[32,128], index: 1, kind: input, shape index: {}]   ;;  %s1015_s2 = inlined_call_operand.vmem [shape: f32[1,128], index: 2, kind: input, shape index: {}]   ;;  %s1016_s3 = inlined_call_operand.vmem [shape: f32[128,128], index: 3, kind: input, shape index: {}]   ;;  %s1017_s4 = inlined_call_operand.vmem [shape: f32[1,128], index: 4, kind: input, shape index: {}]   ;;  %s1018_s5 = inlined_call_operand.vmem [shape: f32[128,128], index: 5, kind: input, shape index: {}]   ;;  %s1019_s6 = inlined_call_operand.vmem [shape: f32[1,128], index: 6, kind: input, shape index: {}]   ;;  %s1020_s7 = inlined_call_operand.vmem [shape: f32[16,128], index: 7, kind: output, shape index: {}]  }
   0x1 LB: > { %s602_s25 = sadd.s32 4294967295, %s806_s24   ;;  %p606_p0 = scmp.ge.s32.totalorder %s806_s24, 1  ;;  %s806_s24 = sphi %s851_s24, %s17_s24  }
   0x2   : > { %p236_p1 = scmp.lt.s32.totalorder %s806_s24, 3 }
   0x4   : > { %p237_p2 = pnand %p606_p0, %p236_p1 }
   0x5   : > { %v275_v0 = vld [vmem:[%s1014_s1] sm:$0xff] (!%p237_p2)  ;;  %v276_v1 = vld [vmem:[%s1014_s1 + $0x8] sm:$0xff] (!%p237_p2)  ;;  %v277_v2 = vld [vmem:[%s1014_s1 + $0x10] sm:$0xff] (!%p237_p2)  ;;  %v808_v3 = vmov (!%p237_p2), 0.0|0.0   ;;  %vm809_vm0 = vmmov (!%p237_p2), 0   ;;  %v810_v6 = vmov (!%p237_p2), 0.0  }
   0x6   : > { %240 = sbr.rel (%p237_p2) target bundleno = 664 (0x298), region = 48  ;;  %735 = vmatprep.subr.bf16.mxu0 (!%p237_p2), %v808_v3  ;;  %v736_v4 = vpack.c.bf16 (!%p237_p2), %v276_v1, %v275_v0  ;;  %v278_v5 = vld [vmem:[%s1014_s1 + $0x18] sm:$0xff] (!%p237_p2)  ;;  %662 = vmatprep.mubr.msk.f32.mxu0 (!%p237_p2), %vm809_vm0, %v810_v6  ;;  %p266_p3 = scmp.lt.s32.totalorder (!%p237_p2), %s602_s25, 1  ;;  %v361_v7 = vld [vmem:[%s1016_s3] sm:$0xff] (!%p237_p2)  ;;  %v362_v8 = vld [vmem:[%s1016_s3 + $0x8] sm:$0xff] (!%p237_p2)  ;;  %vm286_vm1 = vcmask (!%p237_p2), 261120  }
   0x7   : > { %741 = vmatprep.subr.bf16.mxu1 (!%p237_p2), %v808_v3  ;;  %v742_v9 = vpack.c.bf16 (!%p237_p2), %v362_v8, %v361_v7  ;;  %v363_v10 = vld [vmem:[%s1016_s3 + $0x10] sm:$0xff] (!%p237_p2)  ;;  %v364_v11 = vld [vmem:[%s1016_s3 + $0x18] sm:$0xff] (!%p237_p2)  ;;  %697 = vmatprep.mubr.msk.f32.mxu1 (!%p237_p2), %vm809_vm0, %v810_v6  ;;  %v739_v12 = vpack.c.bf16 (!%p237_p2), %v278_v5, %v277_v2  ;;  %v365_v14 = vld [vmem:[%s1016_s3 + $0x20] sm:$0xff] (!%p237_p2) }
   0x8   : > { %737 = vmatpush3.bf16.msra.mxu0 (!%p237_p2), %v736_v4  ;;  %v745_v13 = vpack.c.bf16 (!%p237_p2), %v364_v11, %v363_v10  ;;  %v366_v15 = vld [vmem:[%s1016_s3 + $0x28] sm:$0xff] (!%p237_p2)  ;;  %v367_v18 = vld [vmem:[%s1016_s3 + $0x30] sm:$0xff] (!%p237_p2)  ;;  %v368_v19 = vld [vmem:[%s1016_s3 + $0x38] sm:$0xff] (!%p237_p2) }
   0x9   : > { %738 = vmatprep.subr.bf16.mxu0 (!%p237_p2), %v808_v3  ;;  %743 = vmatpush3.bf16.msra.mxu1 (!%p237_p2), %v742_v9  ;;  %v748_v17 = vpack.c.bf16 (!%p237_p2), %v366_v15, %v365_v14  ;;  %v751_v20 = vpack.c.bf16 (!%p237_p2), %v368_v19, %v367_v18  ;;  %v369_v21 = vld [vmem:[%s1016_s3 + $0x40] sm:$0xff] (!%p237_p2)  ;;  %v370_v22 = vld [vmem:[%s1016_s3 + $0x48] sm:$0xff] (!%p237_p2)  ;;  %v371_v24 = vld [vmem:[%s1016_s3 + $0x50] sm:$0xff] (!%p237_p2) }
   0xa   : > { %744 = vmatprep.subr.bf16.mxu1 (!%p237_p2), %v808_v3  ;;  %v754_v23 = vpack.c.bf16 (!%p237_p2), %v370_v22, %v369_v21  ;;  %v372_v25 = vld [vmem:[%s1016_s3 + $0x58] sm:$0xff] (!%p237_p2)  ;;  %v373_v27 = vld [vmem:[%s1016_s3 + $0x60] sm:$0xff] (!%p237_p2)  ;;  %v374_v28 = vld [vmem:[%s1016_s3 + $0x68] sm:$0xff] (!%p237_p2) }
   0xb   : > { %v757_v26 = vpack.c.bf16 (!%p237_p2), %v372_v25, %v371_v24  ;;  %v760_v29 = vpack.c.bf16 (!%p237_p2), %v374_v28, %v373_v27  ;;  %v375_v30 = vld [vmem:[%s1016_s3 + $0x70] sm:$0xff] (!%p237_p2)  ;;  %v376_v31 = vld [vmem:[%s1016_s3 + $0x78] sm:$0xff] (!%p237_p2)  ;;  %v455_v33 = vld [vmem:[%s1018_s5] sm:$0xff] (!%p237_p2) }
   0xc   : > { %740 = vmatpush3.bf16.msra.mxu0 (!%p237_p2), %v739_v12  ;;  %v763_v32 = vpack.c.bf16 (!%p237_p2), %v376_v31, %v375_v30  ;;  %v456_v34 = vld [vmem:[%s1018_s5 + $0x8] sm:$0xff] (!%p237_p2)  ;;  %v457_v35 = vld [vmem:[%s1018_s5 + $0x10] sm:$0xff] (!%p237_p2)  ;;  %v458_v37 = vld [vmem:[%s1018_s5 + $0x18] sm:$0xff] (!%p237_p2) }
   0xd   : > { %s1022_s25 = smov (!%p266_p3, %s602_s25), 1  ;;  %746 = vmatpush3.bf16.msra.mxu1 %v745_v13  ;;  %765 = vmatprep.subr.bf16.mxu0 %v808_v3  ;;  %v766_v36 = vpack.c.bf16 %v456_v34, %v455_v33  ;;  %v769_v38 = vpack.c.bf16 %v458_v37, %v457_v35  ;;  %v459_v39 = vld [vmem:[%s1018_s5 + $0x20] sm:$0xff]  ;;  %v460_v40 = vld [vmem:[%s1018_s5 + $0x28] sm:$0xff]  ;;  %v461_v42 = vld [vmem:[%s1018_s5 + $0x30] sm:$0xff] }
   0xe   : > { %s607_s19 = sshll.u32 %s1022_s25, 3  ;;  %747 = vmatprep.subr.bf16.mxu1 %v808_v3  ;;  %v772_v41 = vpack.c.bf16 %v460_v40, %v459_v39  ;;  %v462_v43 = vld [vmem:[%s1018_s5 + $0x38] sm:$0xff]  ;;  %v463_v45 = vld [vmem:[%s1018_s5 + $0x40] sm:$0xff]  ;;  %v464_v46 = vld [vmem:[%s1018_s5 + $0x48] sm:$0xff] }
   0xf   : > { %s269_s28 = scalar_lea.vmem %s1013_s0, %s607_s19  ;;  %v775_v44 = vpack.c.bf16 %v462_v43, %v461_v42  ;;  %v778_v47 = vpack.c.bf16 %v464_v46, %v463_v45  ;;  %v465_v48 = vld [vmem:[%s1018_s5 + $0x50] sm:$0xff]  ;;  %v466_v49 = vld [vmem:[%s1018_s5 + $0x58] sm:$0xff]  ;;  %v467_v51 = vld [vmem:[%s1018_s5 + $0x60] sm:$0xff]  ;;  %s273_s29 = scalar_lea.vmem %s1020_s7, %s607_s19 }
  0x10   : > { %v274_v16 = vld [vmem:[%s269_s28] sm:$0xff]  ;;  %v781_v50 = vpack.c.bf16 %v466_v49, %v465_v48  ;;  %v468_v52 = vld [vmem:[%s1018_s5 + $0x68] sm:$0xff]  ;;  %v469_v59 = vld [vmem:[%s1018_s5 + $0x70] sm:$0xff] }
  0x11   : > { %663 = vmatmul.mubr.msk.f32.vlgmr.msra.gmra.mrb[0].mxu0 %vm286_vm1, %v274_v16  ;;  %749 = vmatpush3.bf16.msra.mxu1 %v748_v17  ;;  %v784_v53 = vpack.c.bf16 %v468_v52, %v467_v51  ;;  %v609_v54 = vld [vmem:[%s1015_s2] ss:$0 sm:$0xff]  ;;  %v470_v60 = vld [vmem:[%s1018_s5 + $0x78] sm:$0xff] }
  0x12   : > { %732 = vmatprep.mubr.msk.f32.mxu0 %vm809_vm0, %v810_v6  ;;  %750 = vmatprep.subr.bf16.mxu1 %v808_v3  ;;  %v787_v61 = vpack.c.bf16 %v470_v60, %v469_v59  ;;  %v611_v62 = vld [vmem:[%s1017_s4] ss:$0 sm:$0xff] }
  0x13   : > { %767 = vmatpush3.bf16.msra.mxu0 %v766_v36 }
  0x14   : > { %768 = vmatprep.subr.bf16.mxu0 %v808_v3 }
  0x15   : > { %752 = vmatpush3.bf16.msra.mxu1 %v751_v20 }
  0x16   : > { %753 = vmatprep.subr.bf16.mxu1 %v808_v3 }
  0x17   : > { %770 = vmatpush3.bf16.msra.mxu0 %v769_v38 }
  0x18   : > { %771 = vmatprep.subr.bf16.mxu0 %v808_v3 }
  0x19   : > { %755 = vmatpush3.bf16.msra.mxu1 %v754_v23 }
  0x1a   : > { %756 = vmatprep.subr.bf16.mxu1 %v808_v3 }
  0x1b   : > { %773 = vmatpush3.bf16.msra.mxu0 %v772_v41 }
  0x1c   : > { %774 = vmatprep.subr.bf16.mxu0 %v808_v3 }
  0x1d   : > { %758 = vmatpush3.bf16.msra.mxu1 %v757_v26 }
  0x1e   : > { %759 = vmatprep.subr.bf16.mxu1 %v808_v3 }
  0x1f   : > { %776 = vmatpush3.bf16.msra.mxu0 %v775_v44 }
  0x20   : > { %777 = vmatprep.subr.bf16.mxu0 %v808_v3 }
  0x21   : > { %761 = vmatpush3.bf16.msra.mxu1 %v760_v29 }
  0x22   : > { %762 = vmatprep.subr.bf16.mxu1 %v808_v3 }
  0x23   : > { %779 = vmatpush3.bf16.msra.mxu0 %v778_v47 }
  0x24   : > { %780 = vmatprep.subr.bf16.mxu0 %v808_v3 }
  0x25   : > { %764 = vmatpush3.bf16.msra.mxu1 %v763_v32 }
  0x27   : > { %782 = vmatpush3.bf16.msra.mxu0 %v781_v50 }
  0x28   : > { %783 = vmatprep.subr.bf16.mxu0 %v808_v3 }
  0x2b   : > { %785 = vmatpush3.bf16.msra.mxu0 %v784_v53 }
  0x2c   : > { %786 = vmatprep.subr.bf16.mxu0 %v808_v3  ;;  %v612_v3 = vld [vmem:[%s1019_s6] ss:$0 sm:$0xff] }
  0x2f   : > { %788 = vmatpush3.bf16.msra.mxu0 %v787_v61 }
  0xe4   : > { %v356_v55 = vpop.f32.mrb[0].mxu0 }
  0xe5   : > { %v357_v56 = vadd.f32 %v609_v54, %v356_v55  ;;  %v664_v57 = vpop.f32.mrb[1].mxu0 }
  0xe7   : > { %v360_v58 = vmax.f32 %v357_v56, 0.0 }
  0xe9   : > { %698 = vmatmul.mubr.f32.vlgmr.msra.gmra.mrb[0].mxu1 %v360_v58 }
 0x1bc   : > { %v450_v63 = vpop.f32.mrb[0].mxu1 }
 0x1bd   : > { %v451_v0 = vadd.f32 %v611_v62, %v450_v63  ;;  %v699_v1 = vpop.f32.mrb[1].mxu1 }
 0x1bf   : > { %v454_v2 = vmax.f32 %v451_v0, 0.0 }
 0x1c1   : > { %733 = vmatmul.mubr.f32.vlgmr.msra.gmra.mrb[2].mxu0 %v454_v2 }
 0x294   : > { %v544_v4 = vpop.f32.mrb[2].mxu0 }
 0x295   : > { %v545_v5 = vadd.f32 %v612_v3, %v544_v4  ;;  %v734_v6 = vpop.f32.mrb[3].mxu0 }
 0x297   : > { %548 = vst [vmem:[%s273_s29] sm:$0xff] %v545_v5 }
 0x298 PF: > { %s17_s24 = sadd.s32 1, %s806_s24  }
 0x299   : > { %p14_p4 = scmp.ge.s32.totalorder %s17_s24, 4  }
 0x29b   :  { %16 = sbr.rel (!%p14_p4) target bundleno = 1 (0x1), region = 78 }

</bundles_post_ra>
